<compile_context>
chip_gen: v5e
topology: v5e:2x2
jax: 0.10.0
libtpu: 0.0.40
codegen_flags: <defaults>
</compile_context>

<pallas_src>
import functools

import jax
import jax.numpy as jnp
from jax.experimental import pallas as pl
from jax.experimental.pallas import tpu as pltpu

STATE_SIZE = 8    # fc1 input
HIDDEN = 64       # fc1 / fc2 output
ACTION_SIZE = 4   # fc3 output


def _round_up(v, m):
    return -(-v // m) * m


def dqn_kernel(x_ref, w1_ref, b1_ref, w2_ref, b2_ref, w3_ref, b3_ref, o_ref):
    # In-kernel cast: x arrives as f32 (single HBM stream), bf16 for the MXU.
    x = x_ref[...].astype(jnp.bfloat16)
    # fc1: bf16 x bf16 -> f32 accumulate; bias + ReLU in f32; re-quantize to
    # bf16 right away so any spill of the intermediate is half width.
    h1 = jnp.dot(x, w1_ref[...], preferred_element_type=jnp.float32)
    h1 = jnp.maximum(h1 + b1_ref[...], 0.0).astype(jnp.bfloat16)
    # fc2 + ReLU
    h2 = jnp.dot(h1, w2_ref[...], preferred_element_type=jnp.float32)
    h2 = jnp.maximum(h2 + b2_ref[...], 0.0).astype(jnp.bfloat16)
    # fc3 (no activation)
    out = jnp.dot(h2, w3_ref[...], preferred_element_type=jnp.float32)
    o_ref[...] = (out + b3_ref[...]).astype(o_ref.dtype)


@functools.partial(jax.jit, static_argnames=("tb", "out_dtype"))
def dqn_forward(x, params, *, tb=4096, out_dtype=jnp.bfloat16):
    """DQN forward.  x: (B, 8) float32 -> (B, 4) Q-values in `out_dtype`.

    params: dict of (in, out)-transposed bf16 weights and (1, out) f32 biases
    (see init_params).  On v5e, a moderate tb (~2048-4096) is preferred.
    """
    B = x.shape[0]

    # Tiny batches: pad to a single 16-row tile (negligible cost).  B >= 16 is
    # never padded; ragged tails use Pallas partial blocks (masked stores).
    pad = 16 - B if B < 16 else 0
    if pad:
        x = jnp.pad(x, ((0, pad), (0, 0)))
    Bp = B + pad

    # Tile rows: multiple of 16 (bf16 sublane packing), big enough to amortize
    # the ~0.35us per-grid-step overhead, capped near Bp/2 so batches that can
    # split get >= 2 grid steps (both v7x TensorCores via the parallel axis).
    tb = _round_up(max(tb, 16), 16)
    TB = min(tb, max(16, _round_up(-(-Bp // 2), 16)))
    n_tiles = pl.cdiv(Bp, TB)

    # Weights are already bf16 (init_params); asarray is then a no-op.
    w1 = jnp.asarray(params["w1"], jnp.bfloat16)
    w2 = jnp.asarray(params["w2"], jnp.bfloat16)
    w3 = jnp.asarray(params["w3"], jnp.bfloat16)
    b1 = jnp.asarray(params["b1"], jnp.float32)
    b2 = jnp.asarray(params["b2"], jnp.float32)
    b3 = jnp.asarray(params["b3"], jnp.float32)

    def resident(shape):
        # Constant index_map -> DMA'd once, stays VMEM-resident across steps.
        return pl.BlockSpec(shape, lambda i: (0, 0))

    out_itemsize = jnp.dtype(out_dtype).itemsize
    flops = 2 * Bp * (STATE_SIZE * HIDDEN + HIDDEN * HIDDEN + HIDDEN * ACTION_SIZE)
    bytes_accessed = (
        Bp * STATE_SIZE * 4                                 # x (f32, read once)
        + Bp * ACTION_SIZE * out_itemsize                   # output writeback
        + (STATE_SIZE * HIDDEN + HIDDEN * HIDDEN + HIDDEN * ACTION_SIZE) * 2
        + (2 * HIDDEN + ACTION_SIZE) * 4                    # weights + biases
    )

    out = pl.pallas_call(
        dqn_kernel,
        out_shape=jax.ShapeDtypeStruct((Bp, ACTION_SIZE), out_dtype),
        grid_spec=pltpu.PrefetchScalarGridSpec(
            num_scalar_prefetch=0,
            grid=(n_tiles,),
            in_specs=[
                pl.BlockSpec((TB, STATE_SIZE), lambda i: (i, 0)),   # x tile
                resident((STATE_SIZE, HIDDEN)),                     # w1
                resident((1, HIDDEN)),                              # b1
                resident((HIDDEN, HIDDEN)),                         # w2
                resident((1, HIDDEN)),                              # b2
                resident((HIDDEN, ACTION_SIZE)),                    # w3
                resident((1, ACTION_SIZE)),                         # b3
            ],
            out_specs=pl.BlockSpec((TB, ACTION_SIZE), lambda i: (i, 0)),
        ),
        compiler_params=pltpu.CompilerParams(
            dimension_semantics=("parallel",),
            vmem_limit_bytes=48 * 1024 * 1024,   # ~12 MB used at TB=4096; safe on v7x (64 MiB/TC)
        ),
        cost_estimate=pl.CostEstimate(
            flops=flops, transcendentals=0, bytes_accessed=bytes_accessed),
    )(x, w1, b1, w2, b2, w3, b3)

    if pad:
        out = out[:B]
    return out


def init_params(key):
    """Deterministic init matching PyTorch nn.Linear default
    (U[-1/sqrt(fan_in), 1/sqrt(fan_in)]).  Weights stored transposed (in, out)
    and pre-cast to bf16 once; biases kept f32."""
    def linear(key, fan_in, fan_out):
        kw, kb = jax.random.split(key)
        bound = 1.0 / jnp.sqrt(fan_in)
        w = jax.random.uniform(kw, (fan_in, fan_out), jnp.float32, -bound, bound)
        b = jax.random.uniform(kb, (1, fan_out), jnp.float32, -bound, bound)
        return w.astype(jnp.bfloat16), b

    k1, k2, k3 = jax.random.split(key, 3)
    w1, b1 = linear(k1, STATE_SIZE, HIDDEN)
    w2, b2 = linear(k2, HIDDEN, HIDDEN)
    w3, b3 = linear(k3, HIDDEN, ACTION_SIZE)
    return dict(w1=w1, b1=b1, w2=w2, b2=b2, w3=w3, b3=b3)


def dqn_reference(x, p, out_dtype=jnp.bfloat16):
    """Pure-JAX reference with the same bf16-input / f32-accumulate recipe."""
    bf = jnp.bfloat16
    w1 = jnp.asarray(p["w1"], bf)
    w2 = jnp.asarray(p["w2"], bf)
    w3 = jnp.asarray(p["w3"], bf)
    h1 = jnp.dot(x.astype(bf), w1, preferred_element_type=jnp.float32)
    h1 = jnp.maximum(h1 + p["b1"], 0.0).astype(bf)
    h2 = jnp.dot(h1, w2, preferred_element_type=jnp.float32)
    h2 = jnp.maximum(h2 + p["b2"], 0.0).astype(bf)
    out = jnp.dot(h2, w3, preferred_element_type=jnp.float32) + p["b3"]
    return out.astype(out_dtype)


if __name__ == "__main__":
    key = jax.random.PRNGKey(0)
    kp, kx = jax.random.split(key)
    params = init_params(kp)

    # Small batch (pads 8 -> 16 internally, single grid step).
    batch = 8
    x = jax.random.normal(kx, (batch, STATE_SIZE), jnp.float32)
    out = jax.block_until_ready(dqn_forward(x, params))
    ref = dqn_reference(x, params)
    assert out.shape == (batch, ACTION_SIZE)
    assert out.dtype == jnp.bfloat16
    assert jnp.allclose(out.astype(jnp.float32), ref.astype(jnp.float32),
                        atol=1e-2, rtol=2e-2), "mismatch vs reference (bf16 out)"

    # f32 output path (same kernel; f32 store) for exact-dtype API parity.
    out32 = jax.block_until_ready(dqn_forward(x, params, out_dtype=jnp.float32))
    ref32 = dqn_reference(x, params, out_dtype=jnp.float32)
    assert out32.dtype == jnp.float32
    assert jnp.allclose(out32, ref32, atol=1e-2, rtol=2e-2), "mismatch (f32 out)"

    # Ragged multi-tile batch: exercises partial final block (no wrapper pad)
    # and >= 2 grid steps on the parallel batch axis.
    big_x = jax.random.normal(kx, (1000, STATE_SIZE), jnp.float32)
    big_out = jax.block_until_ready(dqn_forward(big_x, params, tb=256))
    big_ref = dqn_reference(big_x, params)
    assert big_out.shape == (1000, ACTION_SIZE)
    assert jnp.allclose(big_out.astype(jnp.float32), big_ref.astype(jnp.float32),
                        atol=1e-2, rtol=2e-2), "mismatch vs reference (big batch)"

    print("KERNEL_OK")
</pallas_src>

<mosaic_0001>
module attributes {stable_mosaic.version = 11 : i64} {
  func.func @dqn_kernel(%arg0: i32, %arg1: memref<16x8xf32, #tpu.memory_space<vmem>>, %arg2: memref<8x64xbf16, #tpu.memory_space<vmem>>, %arg3: memref<1x64xf32, #tpu.memory_space<vmem>>, %arg4: memref<64x64xbf16, #tpu.memory_space<vmem>>, %arg5: memref<1x64xf32, #tpu.memory_space<vmem>>, %arg6: memref<64x4xbf16, #tpu.memory_space<vmem>>, %arg7: memref<1x4xf32, #tpu.memory_space<vmem>>, %arg8: memref<16x4xbf16, #tpu.memory_space<vmem>>) attributes {dimension_semantics = [#tpu.dimension_semantics<parallel>], iteration_bounds = array<i64: 1>, scalar_prefetch = 0 : i64, scratch_operands = 0 : i64, tpu.core_type = #tpu.core_type<tc>, window_params = [{transform_indices = @transform_0, window_bounds = array<i64: 16, 8>}, {pipeline_mode = #tpu.pipeline_mode<synchronous>, transform_indices = @transform_1, window_bounds = array<i64: 8, 64>}, {pipeline_mode = #tpu.pipeline_mode<synchronous>, transform_indices = @transform_2, window_bounds = array<i64: 1, 64>}, {pipeline_mode = #tpu.pipeline_mode<synchronous>, transform_indices = @transform_3, window_bounds = array<i64: 64, 64>}, {pipeline_mode = #tpu.pipeline_mode<synchronous>, transform_indices = @transform_4, window_bounds = array<i64: 1, 64>}, {pipeline_mode = #tpu.pipeline_mode<synchronous>, transform_indices = @transform_5, window_bounds = array<i64: 64, 4>}, {pipeline_mode = #tpu.pipeline_mode<synchronous>, transform_indices = @transform_6, window_bounds = array<i64: 1, 4>}, {transform_indices = @transform_7, window_bounds = array<i64: 16, 4>}]} {
    %c0 = arith.constant 0 : index
    %c0_0 = arith.constant 0 : index
    %0 = vector.load %arg1[%c0, %c0_0] : memref<16x8xf32, #tpu.memory_space<vmem>>, vector<16x8xf32>
    %1 = arith.truncf %0 : vector<16x8xf32> to vector<16x8xbf16>
    %c0_1 = arith.constant 0 : index
    %c0_2 = arith.constant 0 : index
    %2 = vector.load %arg2[%c0_1, %c0_2] : memref<8x64xbf16, #tpu.memory_space<vmem>>, vector<8x64xbf16>
    %cst = arith.constant dense<0.000000e+00> : vector<16x64xf32>
    %3 = tpu.matmul %1, %2, %cst {dimension_numbers = #tpu.dot_dimension_numbers<[1], [0], [0], [1], [0, 0, 1, 1], [], []>} : vector<16x8xbf16>, vector<8x64xbf16>, vector<16x64xf32> -> vector<16x64xf32>
    %c0_3 = arith.constant 0 : index
    %c0_4 = arith.constant 0 : index
    %4 = vector.load %arg3[%c0_3, %c0_4] : memref<1x64xf32, #tpu.memory_space<vmem>>, vector<1x64xf32>
    %5 = vector.broadcast %4 : vector<1x64xf32> to vector<16x64xf32>
    %6 = arith.addf %3, %5 : vector<16x64xf32>
    %cst_5 = arith.constant 0.000000e+00 : f32
    %7 = vector.broadcast %cst_5 : f32 to vector<16x64xf32>
    %8 = arith.maximumf %6, %7 : vector<16x64xf32>
    %9 = arith.truncf %8 : vector<16x64xf32> to vector<16x64xbf16>
    %c0_6 = arith.constant 0 : index
    %c0_7 = arith.constant 0 : index
    %10 = vector.load %arg4[%c0_6, %c0_7] : memref<64x64xbf16, #tpu.memory_space<vmem>>, vector<64x64xbf16>
    %cst_8 = arith.constant dense<0.000000e+00> : vector<16x64xf32>
    %11 = tpu.matmul %9, %10, %cst_8 {dimension_numbers = #tpu.dot_dimension_numbers<[1], [0], [0], [1], [0, 0, 1, 1], [], []>} : vector<16x64xbf16>, vector<64x64xbf16>, vector<16x64xf32> -> vector<16x64xf32>
    %c0_9 = arith.constant 0 : index
    %c0_10 = arith.constant 0 : index
    %12 = vector.load %arg5[%c0_9, %c0_10] : memref<1x64xf32, #tpu.memory_space<vmem>>, vector<1x64xf32>
    %13 = vector.broadcast %12 : vector<1x64xf32> to vector<16x64xf32>
    %14 = arith.addf %11, %13 : vector<16x64xf32>
    %cst_11 = arith.constant 0.000000e+00 : f32
    %15 = vector.broadcast %cst_11 : f32 to vector<16x64xf32>
    %16 = arith.maximumf %14, %15 : vector<16x64xf32>
    %17 = arith.truncf %16 : vector<16x64xf32> to vector<16x64xbf16>
    %c0_12 = arith.constant 0 : index
    %c0_13 = arith.constant 0 : index
    %18 = vector.load %arg6[%c0_12, %c0_13] : memref<64x4xbf16, #tpu.memory_space<vmem>>, vector<64x4xbf16>
    %cst_14 = arith.constant dense<0.000000e+00> : vector<16x4xf32>
    %19 = tpu.matmul %17, %18, %cst_14 {dimension_numbers = #tpu.dot_dimension_numbers<[1], [0], [0], [1], [0, 0, 1, 1], [], []>} : vector<16x64xbf16>, vector<64x4xbf16>, vector<16x4xf32> -> vector<16x4xf32>
    %c0_15 = arith.constant 0 : index
    %c0_16 = arith.constant 0 : index
    %20 = vector.load %arg7[%c0_15, %c0_16] : memref<1x4xf32, #tpu.memory_space<vmem>>, vector<1x4xf32>
    %21 = vector.broadcast %20 : vector<1x4xf32> to vector<16x4xf32>
    %22 = arith.addf %19, %21 : vector<16x4xf32>
    %23 = arith.truncf %22 : vector<16x4xf32> to vector<16x4xbf16>
    %c0_17 = arith.constant 0 : index
    %c0_18 = arith.constant 0 : index
    %24 = vector.load %arg8[%c0_17, %c0_18] : memref<16x4xbf16, #tpu.memory_space<vmem>>, vector<16x4xbf16>
    tpu.vector_store %arg8[%c0_17, %c0_18], %23 {strides = array<i32>} : memref<16x4xbf16, #tpu.memory_space<vmem>>, vector<16x4xbf16>,
    return
  }
  func.func @transform_0(%arg0: i32) -> (i32, i32) {
    %c0_i32 = arith.constant 0 : i32
    %c0_i32_0 = arith.constant 0 : i32
    return %arg0, %c0_i32 : i32, i32
  }
  func.func @transform_1(%arg0: i32) -> (i32, i32) {
    %c0_i32 = arith.constant 0 : i32
    %c0_i32_0 = arith.constant 0 : i32
    %c0_i32_1 = arith.constant 0 : i32
    return %c0_i32, %c0_i32_0 : i32, i32
  }
  func.func @transform_2(%arg0: i32) -> (i32, i32) {
    %c0_i32 = arith.constant 0 : i32
    %c0_i32_0 = arith.constant 0 : i32
    %c0_i32_1 = arith.constant 0 : i32
    return %c0_i32, %c0_i32_0 : i32, i32
  }
  func.func @transform_3(%arg0: i32) -> (i32, i32) {
    %c0_i32 = arith.constant 0 : i32
    %c0_i32_0 = arith.constant 0 : i32
    %c0_i32_1 = arith.constant 0 : i32
    return %c0_i32, %c0_i32_0 : i32, i32
  }
  func.func @transform_4(%arg0: i32) -> (i32, i32) {
    %c0_i32 = arith.constant 0 : i32
    %c0_i32_0 = arith.constant 0 : i32
    %c0_i32_1 = arith.constant 0 : i32
    return %c0_i32, %c0_i32_0 : i32, i32
  }
  func.func @transform_5(%arg0: i32) -> (i32, i32) {
    %c0_i32 = arith.constant 0 : i32
    %c0_i32_0 = arith.constant 0 : i32
    %c0_i32_1 = arith.constant 0 : i32
    return %c0_i32, %c0_i32_0 : i32, i32
  }
  func.func @transform_6(%arg0: i32) -> (i32, i32) {
    %c0_i32 = arith.constant 0 : i32
    %c0_i32_0 = arith.constant 0 : i32
    %c0_i32_1 = arith.constant 0 : i32
    return %c0_i32, %c0_i32_0 : i32, i32
  }
  func.func @transform_7(%arg0: i32) -> (i32, i32) {
    %c0_i32 = arith.constant 0 : i32
    %c0_i32_0 = arith.constant 0 : i32
    return %arg0, %c0_i32 : i32, i32
  }
}

</mosaic_0001>

<bundles_post_ra>
// kernel: dqn_forward.1
= control target key start
LH: loop header
LB: loop body
LE: loop exit
PB: predicated region body
PF: predicated region fallthrough
CT: control target
= control target key end

     0   :  { %vm39_vm0 = vcmask 1043456   ;;  %vm35_vm1 = vcmask 64512   ;;  %vm96_vm2 = vcmask 523264   ;;  %vm172_vm3 = vcmask 27648   ;;  %s315_s1 = inlined_call_operand.vmem [shape: bf16[8,64], index: 1, kind: input, shape index: {}]   ;;  %s316_s0 = inlined_call_operand.vmem [shape: f32[16,8], index: 0, kind: input, shape index: {}]   ;;  %s317_s2 = inlined_call_operand.vmem [shape: f32[1,64], index: 2, kind: input, shape index: {}]   ;;  %s318_s4 = inlined_call_operand.vmem [shape: f32[1,64], index: 4, kind: input, shape index: {}]   ;;  %s319_s3 = inlined_call_operand.vmem [shape: bf16[64,64], index: 3, kind: input, shape index: {}]   ;;  %s320_s6 = inlined_call_operand.vmem [shape: f32[1,4], index: 6, kind: input, shape index: {}]   ;;  %s321_s5 = inlined_call_operand.vmem [shape: bf16[64,4], index: 5, kind: input, shape index: {}]   ;;  %s322_s7 = inlined_call_operand.vmem [shape: bf16[16,4], index: 7, kind: output, shape index: {}]  }
   0x1   :  { %v30_v0 = vld [vmem:[%s315_s1] sm:$0xf]  ;;  %v28_v2 = vld [vmem:[%s316_s0 + $0x8] sm:$0xff]  ;;  %v217_v5 = vld [vmem:[%s319_s3 + $0x18] sm:$0xff] }
   0x2   :  { %v27_v1 = vld [vmem:[%s316_s0] sm:$0xff]  ;;  %v41_v3 = vsel %vm39_vm0, %v30_v0, 0  ;;  %104 = vmatpush.bf16.msra.mxu1 %v217_v5  ;;  %v216_v6 = vld [vmem:[%s319_s3 + $0x10] sm:$0xff]  ;;  %v215_v7 = vld [vmem:[%s319_s3 + $0x8] sm:$0xff] }
   0x3   :  { %v29_v4 = vpack.c.bf16 %v28_v2, %v27_v1  ;;  %50 = vmatpush.bf16.msra.mxu0 %v41_v3  ;;  %v214_v8 = vld [vmem:[%s319_s3] sm:$0xff]  ;;  %v221_v17 = vld [vmem:[%s321_s5 + $0x18] sm:$0xff]  ;;  %v220_v18 = vld [vmem:[%s321_s5 + $0x10] sm:$0xff] }
   0x4   :  { %v222_v10 = vld [vmem:[%s317_s2] ss:$0 sm:$0xff]  ;;  %160 = vmatpush.bf16.msra.mxu2 %v221_v17  ;;  %v219_v19 = vld [vmem:[%s321_s5 + $0x8] sm:$0xff] }
   0x5   :  { %v218_v20 = vld [vmem:[%s321_s5] sm:$0xff] }
   0x6   :  { %179 = vmatmul.msk.bf16.vlgmr.msra.gmra.mxu0 %vm35_vm1, %v29_v4  ;;  %105 = vmatpush.bf16.msra.mxu1 %v216_v6  ;;  %v223_v22 = vld [vmem:[%s318_s4] ss:$0 sm:$0xff] }
   0x7   :  { %v224_v29 = vld [vmem:[%s320_s6] ss:$0 sm:$0xff] }
   0x8   :  { %161 = vmatpush.bf16.msra.mxu2 %v220_v18 }
   0xa   :  { %106 = vmatpush.bf16.msra.mxu1 %v215_v7 }
   0xc   :  { %162 = vmatpush.bf16.msra.mxu2 %v219_v19 }
   0xe   :  { %107 = vmatpush.bf16.msra.mxu1 %v214_v8 }
  0x10   :  { %163 = vmatpush.bf16.msra.mxu2 %v218_v20 }
  0x83   :  { %v52_v9 = vpop.f32.mrf.mxu0 }
  0x84   :  { %v53_v11 = vadd.f32 %v222_v10, %v52_v9 }
  0x86   :  { %v57_v14 = vmax.f32 %v53_v11, 0.0 }
  0x8b   :  { %v54_v12 = vpop.f32.mrf.mxu0 }
  0x8c   :  { %v55_v13 = vadd.f32 %v222_v10, %v54_v12 }
  0x8e   :  { %v58_v15 = vmax.f32 %v55_v13, 0.0 }
  0x90   :  { %v59_v16 = vpack.c.bf16 %v58_v15, %v57_v14 }
  0x92   :  { %196 = vmatmul.msk.bf16.vlgmr.msra.gmra.mxu1 %vm96_vm2, %v59_v16 }
 0x10f   :  { %v109_v21 = vpop.f32.mrf.mxu1 }
 0x110   :  { %v110_v23 = vadd.f32 %v223_v22, %v109_v21 }
 0x112   :  { %v114_v26 = vmax.f32 %v110_v23, 0.0 }
 0x117   :  { %v111_v24 = vpop.f32.mrf.mxu1 }
 0x118   :  { %v112_v25 = vadd.f32 %v223_v22, %v111_v24 }
 0x11a   :  { %v115_v27 = vmax.f32 %v112_v25, 0.0 }
 0x11c   :  { %v116_v28 = vpack.c.bf16 %v115_v27, %v114_v26 }
 0x11e   :  { %213 = vmatmul.msk.bf16.vlgmr.msra.gmra.mxu2 %vm96_vm2, %v116_v28 }
 0x1a1   :  { %v165_v30 = vpop.f32.mrf.mxu2 }
 0x1a2   :  { %v166_v31 = vadd.f32 %v224_v29, %v165_v30 }
 0x1a4   :  { %v170_v32 = vpack.c.bf16 %v166_v31, %v166_v31 }
 0x1a6   :  { %173 = vst.msk [vmem:[%s322_s7] sm:$0xf] %vm172_vm3, %v170_v32 }
 0x1a9   :  { %v167_v33 = vpop.f32.mrf.mxu2 }
 0x1aa   :  { %v168_v34 = vadd.f32 %v224_v29, %v167_v33 }
 0x1ac   :  { %v171_v35 = vpack.c.bf16 %v168_v34, %v168_v34 }
 0x1ae   :  { %174 = vst.msk [vmem:[%s322_s7 + $0x4] sm:$0xf] %vm172_vm3, %v171_v35 }

</bundles_post_ra>
